<compile_context>
chip_gen: v7x
topology: tpu7x:2x2x1
jax: 0.10.0
libtpu: 0.0.40
codegen_flags: <defaults>
</compile_context>

<pallas_src>
import jax
import jax.numpy as jnp
from jax.experimental import pallas as pl
from jax.experimental.pallas import tpu as pltpu

LANE = 128          # lane width: classifier output padded to lane-dense cols
SUBLANE_BF16 = 16   # bf16 sublane packing: batch tile kept a multiple of 16
TB_MAX = 256        # batch tile cap (conservative for v7x 64 MiB VMEM)


def _round_up(x, m):
    return ((x + m - 1) // m) * m


# ---------------------------------------------------------------------------
# Pallas kernel: fused BERT pooler (dense + tanh) + classifier head (dense).
#   h_ref  : [TB, H]      bf16 CLS hidden tile (stand-in for bert output)
#   wp_ref : [H, H]       bf16 pooler dense weight   (VMEM-resident)
#   bp_ref : [1, H]       f32  pooler dense bias     (VMEM-resident)
#   wc_ref : [H, C_pad]   bf16 classifier weight     (VMEM-resident, padded)
#   bc_ref : [1, C_pad]   f32  classifier bias       (VMEM-resident, padded)
#   out_ref: [TB, C_pad]  f32  logits tile
# ---------------------------------------------------------------------------
def _pooler_classifier_kernel(h_ref, wp_ref, bp_ref, wc_ref, bc_ref, out_ref):
    # bf16 operands on the MXU, f32 accumulation; bias + tanh in f32.
    pooled = jnp.tanh(
        jnp.dot(h_ref[...], wp_ref[...], preferred_element_type=jnp.float32)
        + bp_ref[...]
    )                                                        # [TB, H] f32
    # dr_rate is None in this configuration -> no dropout.
    # TODO(synk): if dr_rate were set, dropout would use pltpu.prng_seed /
    # pltpu.stateful_bernoulli here.
    logits = (
        jnp.dot(pooled.astype(jnp.bfloat16), wc_ref[...],
                preferred_element_type=jnp.float32)
        + bc_ref[...]
    )                                                        # [TB, C_pad] f32
    out_ref[...] = logits


def bert_classifier_forward(input_ids, attention_mask, token_type_ids, params):
    """Mirror of BERTClassifier.forward (dr_rate=None)."""
    del attention_mask, token_type_ids  # consumed by the (stand-in) encoder

    # --- glue: stand-in "bert" -> CLS hidden state via embedding lookup ----
    # TODO(synk): the gather could be fused into the kernel via
    # PrefetchScalarGridSpec + pl.Element rows, but only at 1 row/grid-step;
    # with batch tiling it stays in the wrapper as a single XLA gather.
    cls_ids = input_ids[:, 0]                                 # [B]
    cls_hidden = params["embedding"][cls_ids].astype(jnp.bfloat16)  # [B, H]

    B, H = cls_hidden.shape
    C = params["w_cls"].shape[1]
    C_pad = _round_up(C, LANE)

    # Pad batch to a sublane multiple and to a whole number of tiles.
    B_pad = _round_up(B, SUBLANE_BF16)
    TB = min(TB_MAX, B_pad)
    B_pad = _round_up(B_pad, TB)
    if B_pad != B:
        cls_hidden = jnp.pad(cls_hidden, ((0, B_pad - B), (0, 0)))

    w_pool = params["w_pool"].astype(jnp.bfloat16)            # [H, H]
    b_pool = params["b_pool"].astype(jnp.float32)             # [1, H]
    w_cls = jnp.pad(params["w_cls"],
                    ((0, 0), (0, C_pad - C))).astype(jnp.bfloat16)   # [H, C_pad]
    b_cls = jnp.pad(params["b_cls"],
                    ((0, 0), (0, C_pad - C))).astype(jnp.float32)    # [1, C_pad]

    grid = (B_pad // TB,)

    cost = pl.CostEstimate(
        flops=2 * B_pad * H * H + 2 * B_pad * H * C_pad,
        transcendentals=B_pad * H,
        bytes_accessed=(cls_hidden.size * 2 + w_pool.size * 2 + b_pool.size * 4
                        + w_cls.size * 2 + b_cls.size * 4 + B_pad * C_pad * 4),
    )

    out_padded = pl.pallas_call(
        _pooler_classifier_kernel,
        out_shape=jax.ShapeDtypeStruct((B_pad, C_pad), jnp.float32),
        grid_spec=pltpu.PrefetchScalarGridSpec(
            num_scalar_prefetch=0,
            grid=grid,
            in_specs=[
                pl.BlockSpec((TB, H), lambda i: (i, 0)),      # batch-tiled acts
                pl.BlockSpec((H, H), lambda i: (0, 0)),       # resident weights
                pl.BlockSpec((1, H), lambda i: (0, 0)),
                pl.BlockSpec((H, C_pad), lambda i: (0, 0)),
                pl.BlockSpec((1, C_pad), lambda i: (0, 0)),
            ],
            out_specs=pl.BlockSpec((TB, C_pad), lambda i: (i, 0)),
        ),
        compiler_params=pltpu.CompilerParams(
            dimension_semantics=("parallel",),
        ),
        cost_estimate=cost,
    )(cls_hidden, w_pool, b_pool, w_cls, b_cls)

    return out_padded[:B, :C]


def gen_attention_mask(token_ids, valid_length):
    """JAX equivalent of BERTClassifier.gen_attention_mask."""
    seq_len = token_ids.shape[1]
    pos = jnp.arange(seq_len)[None, :]                        # [1, S]
    return (pos < valid_length[:, None]).astype(jnp.float32)  # [B, S]


def init_params(key, vocab_size, hidden_size, num_classes):
    k1, k2, k3, k4, k5 = jax.random.split(key, 5)
    scale = 1.0 / jnp.sqrt(hidden_size)
    return {
        "embedding": jax.random.normal(k1, (vocab_size, hidden_size), jnp.float32) * 0.02,
        "w_pool": jax.random.normal(k2, (hidden_size, hidden_size), jnp.float32) * scale,
        "b_pool": jax.random.normal(k3, (1, hidden_size), jnp.float32) * 0.01,
        "w_cls": jax.random.normal(k4, (hidden_size, num_classes), jnp.float32) * scale,
        "b_cls": jax.random.normal(k5, (1, num_classes), jnp.float32) * 0.01,
    }


if __name__ == "__main__":
    key = jax.random.PRNGKey(0)

    # small shapes consistent with the module's forward
    batch, seq_len, hidden, num_classes, vocab = 2, 8, 32, 2, 100

    kp, ki, kv = jax.random.split(key, 3)
    params = init_params(kp, vocab, hidden, num_classes)

    input_ids = jax.random.randint(ki, (batch, seq_len), 0, vocab, dtype=jnp.int32)
    valid_length = jnp.array([seq_len, seq_len // 2], dtype=jnp.int32)
    attention_mask = gen_attention_mask(input_ids, valid_length)
    token_type_ids = jnp.zeros((batch, seq_len), dtype=jnp.int32)

    logits = bert_classifier_forward(input_ids, attention_mask, token_type_ids, params)
    jax.block_until_ready(logits)

    # reference check in plain f32 JAX (tolerance loosened for bf16 MXU inputs)
    cls_hidden_ref = params["embedding"][input_ids[:, 0]]
    pooled_ref = jnp.tanh(cls_hidden_ref @ params["w_pool"] + params["b_pool"])
    logits_ref = pooled_ref @ params["w_cls"] + params["b_cls"]
    assert logits.shape == (batch, num_classes)
    assert jnp.allclose(logits, logits_ref, atol=5e-2, rtol=5e-2)

    print("KERNEL_OK")
</pallas_src>

<mosaic_0001>
module attributes {stable_mosaic.version = 11 : i64} {
  func.func @_pooler_classifier_kernel(%arg0: i32, %arg1: memref<16x32xbf16, #tpu.memory_space<vmem>>, %arg2: memref<32x32xbf16, #tpu.memory_space<vmem>>, %arg3: memref<1x32xf32, #tpu.memory_space<vmem>>, %arg4: memref<32x128xbf16, #tpu.memory_space<vmem>>, %arg5: memref<1x128xf32, #tpu.memory_space<vmem>>, %arg6: memref<16x128xf32, #tpu.memory_space<vmem>>) attributes {dimension_semantics = [#tpu.dimension_semantics<parallel>], iteration_bounds = array<i64: 1>, scalar_prefetch = 0 : i64, scratch_operands = 0 : i64, tpu.core_type = #tpu.core_type<tc>, window_params = [{transform_indices = @transform_0, window_bounds = array<i64: 16, 32>}, {pipeline_mode = #tpu.pipeline_mode<synchronous>, transform_indices = @transform_1, window_bounds = array<i64: 32, 32>}, {pipeline_mode = #tpu.pipeline_mode<synchronous>, transform_indices = @transform_2, window_bounds = array<i64: 1, 32>}, {pipeline_mode = #tpu.pipeline_mode<synchronous>, transform_indices = @transform_3, window_bounds = array<i64: 32, 128>}, {pipeline_mode = #tpu.pipeline_mode<synchronous>, transform_indices = @transform_4, window_bounds = array<i64: 1, 128>}, {transform_indices = @transform_5, window_bounds = array<i64: 16, 128>}]} {
    %c0 = arith.constant 0 : index
    %c0_0 = arith.constant 0 : index
    %0 = vector.load %arg1[%c0, %c0_0] : memref<16x32xbf16, #tpu.memory_space<vmem>>, vector<16x32xbf16>
    %c0_1 = arith.constant 0 : index
    %c0_2 = arith.constant 0 : index
    %1 = vector.load %arg2[%c0_1, %c0_2] : memref<32x32xbf16, #tpu.memory_space<vmem>>, vector<32x32xbf16>
    %cst = arith.constant dense<0.000000e+00> : vector<16x32xf32>
    %2 = tpu.matmul %0, %1, %cst {dimension_numbers = #tpu.dot_dimension_numbers<[1], [0], [0], [1], [0, 0, 1, 1], [], []>} : vector<16x32xbf16>, vector<32x32xbf16>, vector<16x32xf32> -> vector<16x32xf32>
    %c0_3 = arith.constant 0 : index
    %c0_4 = arith.constant 0 : index
    %3 = vector.load %arg3[%c0_3, %c0_4] : memref<1x32xf32, #tpu.memory_space<vmem>>, vector<1x32xf32>
    %4 = vector.broadcast %3 : vector<1x32xf32> to vector<16x32xf32>
    %5 = arith.addf %2, %4 : vector<16x32xf32>
    %6 = math.tanh %5 : vector<16x32xf32>
    %7 = arith.truncf %6 : vector<16x32xf32> to vector<16x32xbf16>
    %c0_5 = arith.constant 0 : index
    %c0_6 = arith.constant 0 : index
    %8 = vector.load %arg4[%c0_5, %c0_6] : memref<32x128xbf16, #tpu.memory_space<vmem>>, vector<32x128xbf16>
    %cst_7 = arith.constant dense<0.000000e+00> : vector<16x128xf32>
    %9 = tpu.matmul %7, %8, %cst_7 {dimension_numbers = #tpu.dot_dimension_numbers<[1], [0], [0], [1], [0, 0, 1, 1], [], []>} : vector<16x32xbf16>, vector<32x128xbf16>, vector<16x128xf32> -> vector<16x128xf32>
    %c0_8 = arith.constant 0 : index
    %c0_9 = arith.constant 0 : index
    %10 = vector.load %arg5[%c0_8, %c0_9] : memref<1x128xf32, #tpu.memory_space<vmem>>, vector<1x128xf32>
    %11 = vector.broadcast %10 : vector<1x128xf32> to vector<16x128xf32>
    %12 = arith.addf %9, %11 : vector<16x128xf32>
    %c0_10 = arith.constant 0 : index
    %c0_11 = arith.constant 0 : index
    %13 = vector.load %arg6[%c0_10, %c0_11] : memref<16x128xf32, #tpu.memory_space<vmem>>, vector<16x128xf32>
    tpu.vector_store %arg6[%c0_10, %c0_11], %12 {strides = array<i32>} : memref<16x128xf32, #tpu.memory_space<vmem>>, vector<16x128xf32>,
    return
  }
  func.func @transform_0(%arg0: i32) -> (i32, i32) {
    %c0_i32 = arith.constant 0 : i32
    %c0_i32_0 = arith.constant 0 : i32
    return %arg0, %c0_i32 : i32, i32
  }
  func.func @transform_1(%arg0: i32) -> (i32, i32) {
    %c0_i32 = arith.constant 0 : i32
    %c0_i32_0 = arith.constant 0 : i32
    %c0_i32_1 = arith.constant 0 : i32
    return %c0_i32, %c0_i32_0 : i32, i32
  }
  func.func @transform_2(%arg0: i32) -> (i32, i32) {
    %c0_i32 = arith.constant 0 : i32
    %c0_i32_0 = arith.constant 0 : i32
    %c0_i32_1 = arith.constant 0 : i32
    return %c0_i32, %c0_i32_0 : i32, i32
  }
  func.func @transform_3(%arg0: i32) -> (i32, i32) {
    %c0_i32 = arith.constant 0 : i32
    %c0_i32_0 = arith.constant 0 : i32
    %c0_i32_1 = arith.constant 0 : i32
    return %c0_i32, %c0_i32_0 : i32, i32
  }
  func.func @transform_4(%arg0: i32) -> (i32, i32) {
    %c0_i32 = arith.constant 0 : i32
    %c0_i32_0 = arith.constant 0 : i32
    %c0_i32_1 = arith.constant 0 : i32
    return %c0_i32, %c0_i32_0 : i32, i32
  }
  func.func @transform_5(%arg0: i32) -> (i32, i32) {
    %c0_i32 = arith.constant 0 : i32
    %c0_i32_0 = arith.constant 0 : i32
    return %arg0, %c0_i32 : i32, i32
  }
}

</mosaic_0001>

<bundles_post_ra>
// kernel: tpu_custom_call.1
= control target key start
LH: loop header
LB: loop body
LE: loop exit
PB: predicated region body
PF: predicated region fallthrough
CT: control target
= control target key end

     0   :  { %10 = vsyncpa [#allocation3], 0  ;;  %s484_s0 = inlined_call_operand.hbm [shape: bf16[16,32], index: 0, kind: input, shape index: {}]   ;;  %s485_s1 = inlined_call_operand.hbm [shape: bf16[32,32], index: 1, kind: input, shape index: {}]   ;;  %s486_s2 = inlined_call_operand.vmem [shape: f32[1,32], index: 2, kind: input, shape index: {}]   ;;  %s487_s3 = inlined_call_operand.hbm [shape: bf16[32,128], index: 3, kind: input, shape index: {}]   ;;  %s488_s4 = inlined_call_operand.vmem [shape: f32[1,128], index: 4, kind: input, shape index: {}]   ;;  %s489_s5 = inlined_call_operand.hbm [shape: f32[16,128], index: 5, kind: output, shape index: {}]  }
   0x1   :  { %11 = vsyncpa [#allocation6], 0 }
   0x2   :  { %12 = vsyncpa [#allocation4], 0  ;;  %s372_s18 = smov [#allocation5]   ;;  %s373_s20 = smov [#allocation2]  }
   0x3   :  { %s30_s19 = sshll.u32 %s372_s18, 4  ;;  %s18_s21 = sshll.u32 %s373_s20, 4  ;;  %s31_s19 = int_to_ptr.vmem [resolvable:$true] %s30_s19  ;;  %s412_s21 = int_to_ptr.vmem [resolvable:$true] %s18_s21 }
   0x4   :  { %s278_s24 = scalar_lea.hbm %s485_s1, 256 }
   0x5   :  { %p279_p0 = scmp.ne.s32.totalorder %s485_s1, %s278_s24  ;;  %p282_p1 = scmp.lt.u32.totalorder %s278_s24, %s485_s1 }
   0x7   :  { %p284_p2 = pnand %p282_p1, %p279_p0 }
   0x9   :  { %287 = shalt.err (!%p284_p2)
}
   0xa   :  { %s288_s29 = scalar_lea.vmem %s31_s19, 256  ;;  %p293_p4 = scmp.lt.s32.totalorder %s31_s19, %s31_s19 }
   0xb   :  { %p289_p3 = scmp.ne.s32.totalorder %s31_s19, %s288_s29  ;;  %p294_p5 = scmp.lt.s32.totalorder %s288_s29, %s288_s29 }
   0xd   :  { %p295_p6 = por %p294_p5, %p293_p4 }
   0xf   :  { %p296_p7 = pnand %p295_p6, %p289_p3 }
  0x11   :  { %299 = shalt.err (!%p296_p7)
}
  0x12   :  { %s374_s30 = smov 64   ;;  %s375_s6 = smov 4  }
  0x13   :  { %36 = dma.hbm_to_vmem [thread:$0]  %s485_s1, 256, %s31_s19, [#allocation6], %s374_s30, %s374_s30, %s375_s6  }
  0x14   :  { %s300_s11 = scalar_lea.hbm %s484_s0, 128 }
  0x15   :  { %p301_p8 = scmp.ne.s32.totalorder %s484_s0, %s300_s11  ;;  %p304_p9 = scmp.lt.u32.totalorder %s300_s11, %s484_s0 }
  0x17   :  { %p306_p10 = pnand %p304_p9, %p301_p8 }
  0x19   :  { %309 = shalt.err (!%p306_p10)
}
  0x1a   :  { %s310_s16 = scalar_lea.vmem %s412_s21, 128  ;;  %p315_p12 = scmp.lt.s32.totalorder %s412_s21, %s412_s21 }
  0x1b   :  { %p311_p11 = scmp.ne.s32.totalorder %s412_s21, %s310_s16  ;;  %p316_p13 = scmp.lt.s32.totalorder %s310_s16, %s310_s16 }
  0x1d   :  { %p317_p0 = por %p316_p13, %p315_p12 }
  0x1f   :  { %p318_p1 = pnand %p317_p0, %p311_p11 }
  0x21   :  { %321 = shalt.err (!%p318_p1)
}
  0x22   :  { %24 = dma.hbm_to_vmem [thread:$0]  %s484_s0, 128, %s412_s21, [#allocation3], %s374_s30, %s374_s30, %s375_s6  }
  0x23   :  { %s376_s18 = smov [#allocation7]   ;;  %s322_s23 = scalar_lea.hbm %s487_s3, 256 }
  0x24   :  { %s44_s19 = sshll.u32 %s376_s18, 4  ;;  %p323_p2 = scmp.ne.s32.totalorder %s487_s3, %s322_s23  ;;  %s45_s19 = int_to_ptr.vmem [resolvable:$true] %s44_s19 }
  0x25   :  { %p326_p3 = scmp.lt.u32.totalorder %s322_s23, %s487_s3 }
  0x27   :  { %p328_p4 = pnand %p326_p3, %p323_p2 }
  0x29   :  { %331 = shalt.err (!%p328_p4)
}
  0x2a   :  { %s332_s28 = scalar_lea.vmem %s45_s19, 256  ;;  %p337_p6 = scmp.lt.s32.totalorder %s45_s19, %s45_s19 }
  0x2b   :  { %p333_p5 = scmp.ne.s32.totalorder %s45_s19, %s332_s28  ;;  %p338_p7 = scmp.lt.s32.totalorder %s332_s28, %s332_s28 }
  0x2d   :  { %p339_p8 = por %p338_p7, %p337_p6 }
  0x2f   :  { %p340_p9 = pnand %p339_p8, %p333_p5 }
  0x31   :  { %343 = shalt.err (!%p340_p9)
}
  0x32   :  { %50 = dma.hbm_to_vmem [thread:$0]  %s487_s3, 256, %s45_s19, [#allocation6], %s374_s30, %s374_s30, %s375_s6  }
  0x33   :  { %366 = dma.done.wait [#allocation3], 128  }
  0x34   :  { %367 = vsyncadd [#allocation3], 4294967168 }
  0x35   :  { %368 = dma.done.wait [#allocation6], 512  }
  0x36   :  { %369 = vsyncadd [#allocation6], 4294966784  ;;  %v377_v0 = vmov 0.0   ;;  %vm378_vm0 = vmmov 0   ;;  %v269_v1 = vld [vmem:[#allocation5] sm:$0xff]   ;;  %v270_v2 = vld [vmem:[#allocation5 + $0x8] sm:$0xff]  }
  0x37   :  { %243 = vmatprep.subr.bf16.mxu0 %v377_v0  ;;  %247 = vmatprep.mubr.msk.bf16.mxu0 %vm378_vm0, %v377_v0  ;;  %v271_v3 = vld [vmem:[#allocation2] sm:$0xff]   ;;  %vm93_vm1 = vcmask 261120   ;;  %v272_v4 = vld [vmem:[#allocation7] sm:$0xff]   ;;  %s379_s7 = smov [#allocation8]  }
  0x38   :  { %251 = vmatprep.subr.bf16.mxu1 %v377_v0  ;;  %255 = vmatprep.mubr.msk.bf16.mxu1 %vm378_vm0, %v377_v0  ;;  %v273_v5 = vld [vmem:[#allocation7 + $0x8] sm:$0xff]   ;;  %s215_s8 = sshll.u32 %s379_s7, 4  ;;  %s216_s8 = int_to_ptr.vmem [resolvable:$true] %s215_s8 }
  0x39   :  { %244 = vmatpush3.bf16.msra.mxu0 %v269_v1  ;;  %252 = vmatpush3.bf16.msra.mxu1 %v272_v4  ;;  %v228_v6 = vld [vmem:[%s486_s2] ss:$0 sm:$0xff]  ;;  %s344_s2 = scalar_lea.vmem %s216_s8, 256  ;;  %p349_p11 = scmp.lt.s32.totalorder %s216_s8, %s216_s8 }
  0x3a   :  { %245 = vmatprep.subr.bf16.mxu0 %v377_v0  ;;  %253 = vmatprep.subr.bf16.mxu1 %v377_v0  ;;  %v233_v16 = vld [vmem:[%s488_s4] ss:$0 sm:$0xff]  ;;  %p345_p10 = scmp.ne.s32.totalorder %s216_s8, %s344_s2  ;;  %p350_p12 = scmp.lt.s32.totalorder %s344_s2, %s344_s2 }
  0x3c   :  { %p351_p13 = por %p350_p12, %p349_p11 }
  0x3d   :  { %246 = vmatpush3.bf16.msra.mxu0 %v270_v2  ;;  %254 = vmatpush3.bf16.msra.mxu1 %v273_v5 }
  0x3e   :  { %p352_p0 = pnand %p351_p13, %p345_p10 }
  0x40   :  { %248 = vmatmul.mubr.msk.bf16.vlgmr.msra.gmra.mrb[0].mxu0 %vm93_vm1, %v271_v3 }
 0x113   :  { %v131_v7 = vpop.f32.mrb[0].mxu0 }
 0x114   :  { %v132_v8 = vadd.f32 %v228_v6, %v131_v7  ;;  %v249_v9 = vpop.f32.mrb[1].mxu0 }
 0x115   :  { %v134_v10 = vpop.f32.mrb[2].mxu0 }
 0x116   :  { %v135_v11 = vadd.f32 %v228_v6, %v134_v10  ;;  %v250_v12 = vpop.f32.mrb[3].mxu0  ;;  %274 = vtanh.f32 %v132_v8 }
 0x118   :  { %276 = vtanh.f32 %v135_v11 }
 0x120   :  { %v275_v13 = vpop.eup %274 }
 0x122   :  { %v277_v14 = vpop.eup %276 }
 0x123   :  { %v140_v15 = vpack.c.bf16 %v277_v14, %v275_v13 }
 0x125   :  { %256 = vmatmul.mubr.msk.bf16.vlgmr.msra.gmra.mrb[0].mxu1 %vm93_vm1, %v140_v15 }
 0x1f8   :  { %v201_v17 = vpop.f32.mrb[0].mxu1 }
 0x1f9   :  { %v202_v18 = vadd.f32 %v233_v16, %v201_v17  ;;  %v257_v19 = vpop.f32.mrb[1].mxu1 }
 0x1fa   :  { %v204_v20 = vpop.f32.mrb[2].mxu1 }
 0x1fb   :  { %208 = vst [vmem:[#allocation8] sm:$0xff] %v202_v18  ;;  %v205_v21 = vadd.f32 %v233_v16, %v204_v20  ;;  %v258_v22 = vpop.f32.mrb[3].mxu1 }
 0x1fd   :  { %209 = vst [vmem:[#allocation8 + $0x8] sm:$0xff] %v205_v21 }
 0x1fe   :  { %355 = shalt.err (!%p352_p0)
}
 0x1ff   :  { %s356_s10 = scalar_lea.hbm %s489_s5, 256 }
 0x200   :  { %p357_p1 = scmp.ne.s32.totalorder %s489_s5, %s356_s10  ;;  %p360_p2 = scmp.lt.u32.totalorder %s356_s10, %s489_s5 }
 0x202   :  { %p362_p3 = pnand %p360_p2, %p357_p1 }
 0x204   :  { %365 = shalt.err (!%p362_p3)
}
 0x205   :  { %s380_s15 = smov 128   ;;  %s381_s16 = smov 8  }
 0x206   :  { %221 = dma.vmem_to_hbm [thread:$0]  %s216_s8, 256, %s489_s5, [#allocation4], %s380_s15, %s380_s15, %s381_s16  }
 0x207   :  { %370 = dma.done.wait [#allocation4], 256  }
 0x208   :  { %371 = vsyncadd [#allocation4], 4294967040 }
 0x209   :  { %225 = vsyncpa [#allocation3], 1 }
 0x20a   :  { %226 = vsyncpa [#allocation6], 1 }
 0x20b   :  { %227 = vsyncpa [#allocation4], 1 }

</bundles_post_ra>
